<compile_context>
chip_gen: v7x
topology: tpu7x:2x2x1
jax: 0.10.0
libtpu: 0.0.40
codegen_flags: <defaults>
</compile_context>

<pallas_src>
import functools
import math

import jax
import jax.numpy as jnp
from jax import lax
from jax.experimental import pallas as pl
from jax.experimental.pallas import tpu as pltpu

# ---- small, module-consistent shapes -------------------------------------
B = 2          # batch
S = 8          # sequence length
H = 32         # hidden size
NH = 4         # num_attention_heads
HD = H // NH   # attention_head_size


def _attn_kernel(num_heads, head_dim, hidden_size,
                 hid_ref, w_ref, b_ref, bias_ref, out_ref):
    """One grid step == one batch element.

    hid_ref : (1, S, H)       bf16 hidden states
    w_ref   : (H, 3H)         bf16 fused [Wq*scale | Wk | Wv]
    b_ref   : (1, 3H)         f32 fused [bq*scale | bk | bv]
    bias_ref: (1, NH, S, S)   bf16 rel_pos + rel_2d_pos + additive mask bias
    out_ref : (1, S, H)       f32 merged-head context
    """
    x = hid_ref[0]                     # (S, H) bf16
    w = w_ref[...]                     # (H, 3H) bf16

    # One fused bf16 MXU pass for Q|K|V, f32 accumulation; q-scale already
    # folded into Wq / bq by the wrapper.
    qkv = jnp.dot(x, w, preferred_element_type=jnp.float32) + b_ref[...]  # (S,3H) f32

    ctx_heads = []
    for h in range(num_heads):         # static unroll (NH small)
        lo = h * head_dim
        q = qkv[:, lo:lo + head_dim].astype(jnp.bfloat16)                       # (S,HD)
        k = qkv[:, hidden_size + lo:hidden_size + lo + head_dim].astype(jnp.bfloat16)
        v = qkv[:, 2 * hidden_size + lo:2 * hidden_size + lo + head_dim].astype(jnp.bfloat16)

        # q @ k^T without materializing a transpose: contract last dims.
        s = lax.dot_general(q, k, (((1,), (1,)), ((), ())),
                            preferred_element_type=jnp.float32)                 # (S,S) f32
        s = s + bias_ref[0, h].astype(jnp.float32)   # rel_pos + rel_2d + mask

        # Numerically stable softmax in f32; reciprocal on the EUP slot.
        m = jnp.max(s, axis=-1, keepdims=True)
        e = jnp.exp(s - m)
        p = e * pl.reciprocal(jnp.sum(e, axis=-1, keepdims=True), approx=True)

        ctx_heads.append(jnp.dot(p.astype(jnp.bfloat16), v,
                                 preferred_element_type=jnp.float32))           # (S,HD)

    # Lane-dense writeback: merge heads once, store the full (S, H) block.
    out_ref[0] = jnp.concatenate(ctx_heads, axis=-1).astype(out_ref.dtype)


@jax.jit
def ernie_layout_self_attention(hidden, wq, bq, wk, bk, wv, bv,
                                rel_pos, rel_2d, mask):
    b_sz, s_len, hid = hidden.shape
    nh = rel_pos.shape[1]
    hd = hid // nh
    scale = 1.0 / math.sqrt(hd)

    # ---- wrapper-side fusions (cheap, fused XLA ops) ----------------------
    # Fold 1/sqrt(head_dim) into the query weight AND bias (PyTorch applies
    # the scale after the linear incl. bias, so this is exact).
    w_qkv = jnp.concatenate([wq * scale, wk, wv], axis=1).astype(jnp.bfloat16)  # (H, 3H)
    b_qkv = jnp.concatenate([bq * scale, bk, bv], axis=1).astype(jnp.float32)   # (1, 3H)
    x = hidden.astype(jnp.bfloat16)

    # Pre-sum both attention biases and fold the mask as a large finite
    # negative additive bias (-1e30 is exactly representable in bf16; avoids
    # -inf overflow).  bf16 halves the dominant O(B*NH*S^2) HBM traffic.
    mask_bias = jnp.where(mask != 0, jnp.float32(-1e30), jnp.float32(0.0))
    bias = (rel_pos + rel_2d + mask_bias).astype(jnp.bfloat16)                  # (B,NH,S,S)

    kernel = functools.partial(_attn_kernel, nh, hd, hid)
    return pl.pallas_call(
        kernel,
        out_shape=jax.ShapeDtypeStruct((b_sz, s_len, hid), jnp.float32),
        grid_spec=pltpu.PrefetchScalarGridSpec(
            num_scalar_prefetch=0,
            grid=(b_sz,),                                         # batch-parallel grid
            in_specs=[
                pl.BlockSpec((1, s_len, hid), lambda b: (b, 0, 0)),         # hidden
                pl.BlockSpec((hid, 3 * hid), lambda b: (0, 0)),             # W_qkv (resident)
                pl.BlockSpec((1, 3 * hid), lambda b: (0, 0)),               # b_qkv (resident)
                pl.BlockSpec((1, nh, s_len, s_len), lambda b: (b, 0, 0, 0)),  # bias
            ],
            out_specs=pl.BlockSpec((1, s_len, hid), lambda b: (b, 0, 0)),
        ),
        compiler_params=pltpu.CompilerParams(
            dimension_semantics=("parallel",),       # megacore-shardable on v7x
            vmem_limit_bytes=32 * 1024 * 1024),
    )(x, w_qkv, b_qkv, bias)


def _reference(hidden, wq, bq, wk, bk, wv, bv, rel_pos, rel_2d, mask):
    """Pure-JAX f32 reference mirroring the PyTorch forward (eval mode)."""
    q = hidden @ wq + bq[0]
    k = hidden @ wk + bk[0]
    v = hidden @ wv + bv[0]
    split = lambda t: t.reshape(B, S, NH, HD).transpose(0, 2, 1, 3)
    q, k, v = split(q), split(k), split(v)
    q = q / math.sqrt(HD)
    scores = jnp.einsum("bhqd,bhkd->bhqk", q, k) + rel_pos + rel_2d
    scores = jnp.where(mask.astype(bool), jnp.finfo(jnp.float32).min, scores)
    probs = jax.nn.softmax(scores.astype(jnp.float32), axis=-1)
    ctx = jnp.einsum("bhqk,bhkd->bhqd", probs, v)
    return ctx.transpose(0, 2, 1, 3).reshape(B, S, H)


if __name__ == "__main__":
    key = jax.random.PRNGKey(0)
    ks = jax.random.split(key, 10)
    std = 0.02

    hidden = jax.random.normal(ks[0], (B, S, H), jnp.float32)
    wq = std * jax.random.normal(ks[1], (H, H), jnp.float32)
    wk = std * jax.random.normal(ks[2], (H, H), jnp.float32)
    wv = std * jax.random.normal(ks[3], (H, H), jnp.float32)
    bq = std * jax.random.normal(ks[4], (1, H), jnp.float32)
    bk = std * jax.random.normal(ks[5], (1, H), jnp.float32)
    bv = std * jax.random.normal(ks[6], (1, H), jnp.float32)
    rel_pos = jax.random.normal(ks[7], (B, NH, S, S), jnp.float32)
    rel_2d = jax.random.normal(ks[8], (B, NH, S, S), jnp.float32)
    # mask: 1 == masked-out key position (as consumed by masked_fill_); mask
    # the last two keys of batch element 1.
    mask = jnp.zeros((B, 1, 1, S), jnp.int32).at[1, 0, 0, -2:].set(1)

    out = ernie_layout_self_attention(hidden, wq, bq, wk, bk, wv, bv,
                                      rel_pos, rel_2d, mask)
    out = jax.block_until_ready(out)

    ref = _reference(hidden, wq, bq, wk, bk, wv, bv, rel_pos, rel_2d, mask)
    assert out.shape == (B, S, H)
    # Tolerance budget: bf16 quantization of hidden/W/bias/probs plus the
    # approximate EUP reciprocal gives ~2-3e-3 max abs error on O(0.1) outputs;
    # 1e-2 keeps a comfortable margin while still catching any layout /
    # indexing / masking bug (those produce O(0.1) errors).
    assert jnp.allclose(out, ref, atol=1e-2, rtol=1e-2), "mismatch vs reference"

    print("KERNEL_OK")
</pallas_src>

<mosaic_0001>
module attributes {stable_mosaic.version = 11 : i64} {
  func.func @_attn_kernel(%arg0: i32, %arg1: memref<1x8x32xbf16, #tpu.memory_space<vmem>>, %arg2: memref<32x96xbf16, #tpu.memory_space<vmem>>, %arg3: memref<1x96xf32, #tpu.memory_space<vmem>>, %arg4: memref<1x4x8x8xbf16, #tpu.memory_space<vmem>>, %arg5: memref<1x8x32xf32, #tpu.memory_space<vmem>>) attributes {dimension_semantics = [#tpu.dimension_semantics<parallel>], iteration_bounds = array<i64: 2>, scalar_prefetch = 0 : i64, scratch_operands = 0 : i64, tpu.core_type = #tpu.core_type<tc>, window_params = [{transform_indices = @transform_0, window_bounds = array<i64: 1, 8, 32>}, {pipeline_mode = #tpu.pipeline_mode<synchronous>, transform_indices = @transform_1, window_bounds = array<i64: 32, 96>}, {pipeline_mode = #tpu.pipeline_mode<synchronous>, transform_indices = @transform_2, window_bounds = array<i64: 1, 96>}, {transform_indices = @transform_3, window_bounds = array<i64: 1, 4, 8, 8>}, {transform_indices = @transform_4, window_bounds = array<i64: 1, 8, 32>}]} {
    %c0 = arith.constant 0 : index
    %c0_0 = arith.constant 0 : index
    %c0_1 = arith.constant 0 : index
    %0 = vector.load %arg1[%c0, %c0_0, %c0_1] : memref<1x8x32xbf16, #tpu.memory_space<vmem>>, vector<1x8x32xbf16>
    %1 = vector.shape_cast %0 : vector<1x8x32xbf16> to vector<8x32xbf16>
    %c0_2 = arith.constant 0 : index
    %c0_3 = arith.constant 0 : index
    %2 = vector.load %arg2[%c0_2, %c0_3] : memref<32x96xbf16, #tpu.memory_space<vmem>>, vector<32x96xbf16>
    %cst = arith.constant dense<0.000000e+00> : vector<8x96xf32>
    %3 = tpu.matmul %1, %2, %cst {dimension_numbers = #tpu.dot_dimension_numbers<[1], [0], [0], [1], [0, 0, 1, 1], [], []>} : vector<8x32xbf16>, vector<32x96xbf16>, vector<8x96xf32> -> vector<8x96xf32>
    %c0_4 = arith.constant 0 : index
    %c0_5 = arith.constant 0 : index
    %4 = vector.load %arg3[%c0_4, %c0_5] : memref<1x96xf32, #tpu.memory_space<vmem>>, vector<1x96xf32>
    %5 = vector.broadcast %4 : vector<1x96xf32> to vector<8x96xf32>
    %6 = arith.addf %3, %5 : vector<8x96xf32>
    %7 = vector.extract_strided_slice %6 {offsets = [0, 0], sizes = [8, 8], strides = [1, 1]} : vector<8x96xf32> to vector<8x8xf32>
    %8 = arith.truncf %7 : vector<8x8xf32> to vector<8x8xbf16>
    %9 = vector.extract_strided_slice %6 {offsets = [0, 32], sizes = [8, 8], strides = [1, 1]} : vector<8x96xf32> to vector<8x8xf32>
    %10 = arith.truncf %9 : vector<8x8xf32> to vector<8x8xbf16>
    %11 = vector.extract_strided_slice %6 {offsets = [0, 64], sizes = [8, 8], strides = [1, 1]} : vector<8x96xf32> to vector<8x8xf32>
    %12 = arith.truncf %11 : vector<8x8xf32> to vector<8x8xbf16>
    %cst_6 = arith.constant dense<0.000000e+00> : vector<8x8xf32>
    %13 = tpu.matmul %8, %10, %cst_6 {dimension_numbers = #tpu.dot_dimension_numbers<[1], [1], [0], [0], [0, 0, 1, 0], [], []>} : vector<8x8xbf16>, vector<8x8xbf16>, vector<8x8xf32> -> vector<8x8xf32>
    %c0_7 = arith.constant 0 : index
    %c0_8 = arith.constant 0 : index
    %c0_9 = arith.constant 0 : index
    %c0_10 = arith.constant 0 : index
    %14 = vector.load %arg4[%c0_7, %c0_8, %c0_9, %c0_10] : memref<1x4x8x8xbf16, #tpu.memory_space<vmem>>, vector<1x1x8x8xbf16>
    %15 = vector.shape_cast %14 : vector<1x1x8x8xbf16> to vector<8x8xbf16>
    %16 = arith.extf %15 : vector<8x8xbf16> to vector<8x8xf32>
    %17 = arith.addf %13, %16 : vector<8x8xf32>
    %cst_11 = arith.constant dense<0xFF800000> : vector<8xf32>
    %18 = vector.multi_reduction <maximumf>, %17, %cst_11 [1] : vector<8x8xf32> to vector<8xf32>
    %19 = vector.shape_cast %18 : vector<8xf32> to vector<8x1xf32>
    %20 = vector.broadcast %19 : vector<8x1xf32> to vector<8x8xf32>
    %21 = arith.subf %17, %20 : vector<8x8xf32>
    %22 = math.exp %21 : vector<8x8xf32>
    %cst_12 = arith.constant dense<0.000000e+00> : vector<8xf32>
    %23 = vector.multi_reduction <add>, %22, %cst_12 [1] : vector<8x8xf32> to vector<8xf32>
    %24 = vector.shape_cast %23 : vector<8xf32> to vector<8x1xf32>
    %25 = tpu.reciprocal %24 {approx = true} : vector<8x1xf32> -> vector<8x1xf32>
    %26 = vector.broadcast %25 : vector<8x1xf32> to vector<8x8xf32>
    %27 = arith.mulf %22, %26 : vector<8x8xf32>
    %28 = arith.truncf %27 : vector<8x8xf32> to vector<8x8xbf16>
    %cst_13 = arith.constant dense<0.000000e+00> : vector<8x8xf32>
    %29 = tpu.matmul %28, %12, %cst_13 {dimension_numbers = #tpu.dot_dimension_numbers<[1], [0], [0], [1], [0, 0, 1, 1], [], []>} : vector<8x8xbf16>, vector<8x8xbf16>, vector<8x8xf32> -> vector<8x8xf32>
    %30 = vector.extract_strided_slice %6 {offsets = [0, 8], sizes = [8, 8], strides = [1, 1]} : vector<8x96xf32> to vector<8x8xf32>
    %31 = arith.truncf %30 : vector<8x8xf32> to vector<8x8xbf16>
    %32 = vector.extract_strided_slice %6 {offsets = [0, 40], sizes = [8, 8], strides = [1, 1]} : vector<8x96xf32> to vector<8x8xf32>
    %33 = arith.truncf %32 : vector<8x8xf32> to vector<8x8xbf16>
    %34 = vector.extract_strided_slice %6 {offsets = [0, 72], sizes = [8, 8], strides = [1, 1]} : vector<8x96xf32> to vector<8x8xf32>
    %35 = arith.truncf %34 : vector<8x8xf32> to vector<8x8xbf16>
    %cst_14 = arith.constant dense<0.000000e+00> : vector<8x8xf32>
    %36 = tpu.matmul %31, %33, %cst_14 {dimension_numbers = #tpu.dot_dimension_numbers<[1], [1], [0], [0], [0, 0, 1, 0], [], []>} : vector<8x8xbf16>, vector<8x8xbf16>, vector<8x8xf32> -> vector<8x8xf32>
    %c0_15 = arith.constant 0 : index
    %c1 = arith.constant 1 : index
    %c0_16 = arith.constant 0 : index
    %c0_17 = arith.constant 0 : index
    %37 = vector.load %arg4[%c0_15, %c1, %c0_16, %c0_17] : memref<1x4x8x8xbf16, #tpu.memory_space<vmem>>, vector<1x1x8x8xbf16>
    %38 = vector.shape_cast %37 : vector<1x1x8x8xbf16> to vector<8x8xbf16>
    %39 = arith.extf %38 : vector<8x8xbf16> to vector<8x8xf32>
    %40 = arith.addf %36, %39 : vector<8x8xf32>
    %cst_18 = arith.constant dense<0xFF800000> : vector<8xf32>
    %41 = vector.multi_reduction <maximumf>, %40, %cst_18 [1] : vector<8x8xf32> to vector<8xf32>
    %42 = vector.shape_cast %41 : vector<8xf32> to vector<8x1xf32>
    %43 = vector.broadcast %42 : vector<8x1xf32> to vector<8x8xf32>
    %44 = arith.subf %40, %43 : vector<8x8xf32>
    %45 = math.exp %44 : vector<8x8xf32>
    %cst_19 = arith.constant dense<0.000000e+00> : vector<8xf32>
    %46 = vector.multi_reduction <add>, %45, %cst_19 [1] : vector<8x8xf32> to vector<8xf32>
    %47 = vector.shape_cast %46 : vector<8xf32> to vector<8x1xf32>
    %48 = tpu.reciprocal %47 {approx = true} : vector<8x1xf32> -> vector<8x1xf32>
    %49 = vector.broadcast %48 : vector<8x1xf32> to vector<8x8xf32>
    %50 = arith.mulf %45, %49 : vector<8x8xf32>
    %51 = arith.truncf %50 : vector<8x8xf32> to vector<8x8xbf16>
    %cst_20 = arith.constant dense<0.000000e+00> : vector<8x8xf32>
    %52 = tpu.matmul %51, %35, %cst_20 {dimension_numbers = #tpu.dot_dimension_numbers<[1], [0], [0], [1], [0, 0, 1, 1], [], []>} : vector<8x8xbf16>, vector<8x8xbf16>, vector<8x8xf32> -> vector<8x8xf32>
    %53 = vector.extract_strided_slice %6 {offsets = [0, 16], sizes = [8, 8], strides = [1, 1]} : vector<8x96xf32> to vector<8x8xf32>
    %54 = arith.truncf %53 : vector<8x8xf32> to vector<8x8xbf16>
    %55 = vector.extract_strided_slice %6 {offsets = [0, 48], sizes = [8, 8], strides = [1, 1]} : vector<8x96xf32> to vector<8x8xf32>
    %56 = arith.truncf %55 : vector<8x8xf32> to vector<8x8xbf16>
    %57 = vector.extract_strided_slice %6 {offsets = [0, 80], sizes = [8, 8], strides = [1, 1]} : vector<8x96xf32> to vector<8x8xf32>
    %58 = arith.truncf %57 : vector<8x8xf32> to vector<8x8xbf16>
    %cst_21 = arith.constant dense<0.000000e+00> : vector<8x8xf32>
    %59 = tpu.matmul %54, %56, %cst_21 {dimension_numbers = #tpu.dot_dimension_numbers<[1], [1], [0], [0], [0, 0, 1, 0], [], []>} : vector<8x8xbf16>, vector<8x8xbf16>, vector<8x8xf32> -> vector<8x8xf32>
    %c0_22 = arith.constant 0 : index
    %c2 = arith.constant 2 : index
    %c0_23 = arith.constant 0 : index
    %c0_24 = arith.constant 0 : index
    %60 = vector.load %arg4[%c0_22, %c2, %c0_23, %c0_24] : memref<1x4x8x8xbf16, #tpu.memory_space<vmem>>, vector<1x1x8x8xbf16>
    %61 = vector.shape_cast %60 : vector<1x1x8x8xbf16> to vector<8x8xbf16>
    %62 = arith.extf %61 : vector<8x8xbf16> to vector<8x8xf32>
    %63 = arith.addf %59, %62 : vector<8x8xf32>
    %cst_25 = arith.constant dense<0xFF800000> : vector<8xf32>
    %64 = vector.multi_reduction <maximumf>, %63, %cst_25 [1] : vector<8x8xf32> to vector<8xf32>
    %65 = vector.shape_cast %64 : vector<8xf32> to vector<8x1xf32>
    %66 = vector.broadcast %65 : vector<8x1xf32> to vector<8x8xf32>
    %67 = arith.subf %63, %66 : vector<8x8xf32>
    %68 = math.exp %67 : vector<8x8xf32>
    %cst_26 = arith.constant dense<0.000000e+00> : vector<8xf32>
    %69 = vector.multi_reduction <add>, %68, %cst_26 [1] : vector<8x8xf32> to vector<8xf32>
    %70 = vector.shape_cast %69 : vector<8xf32> to vector<8x1xf32>
    %71 = tpu.reciprocal %70 {approx = true} : vector<8x1xf32> -> vector<8x1xf32>
    %72 = vector.broadcast %71 : vector<8x1xf32> to vector<8x8xf32>
    %73 = arith.mulf %68, %72 : vector<8x8xf32>
    %74 = arith.truncf %73 : vector<8x8xf32> to vector<8x8xbf16>
    %cst_27 = arith.constant dense<0.000000e+00> : vector<8x8xf32>
    %75 = tpu.matmul %74, %58, %cst_27 {dimension_numbers = #tpu.dot_dimension_numbers<[1], [0], [0], [1], [0, 0, 1, 1], [], []>} : vector<8x8xbf16>, vector<8x8xbf16>, vector<8x8xf32> -> vector<8x8xf32>
    %76 = vector.extract_strided_slice %6 {offsets = [0, 24], sizes = [8, 8], strides = [1, 1]} : vector<8x96xf32> to vector<8x8xf32>
    %77 = arith.truncf %76 : vector<8x8xf32> to vector<8x8xbf16>
    %78 = vector.extract_strided_slice %6 {offsets = [0, 56], sizes = [8, 8], strides = [1, 1]} : vector<8x96xf32> to vector<8x8xf32>
    %79 = arith.truncf %78 : vector<8x8xf32> to vector<8x8xbf16>
    %80 = vector.extract_strided_slice %6 {offsets = [0, 88], sizes = [8, 8], strides = [1, 1]} : vector<8x96xf32> to vector<8x8xf32>
    %81 = arith.truncf %80 : vector<8x8xf32> to vector<8x8xbf16>
    %cst_28 = arith.constant dense<0.000000e+00> : vector<8x8xf32>
    %82 = tpu.matmul %77, %79, %cst_28 {dimension_numbers = #tpu.dot_dimension_numbers<[1], [1], [0], [0], [0, 0, 1, 0], [], []>} : vector<8x8xbf16>, vector<8x8xbf16>, vector<8x8xf32> -> vector<8x8xf32>
    %c0_29 = arith.constant 0 : index
    %c3 = arith.constant 3 : index
    %c0_30 = arith.constant 0 : index
    %c0_31 = arith.constant 0 : index
    %83 = vector.load %arg4[%c0_29, %c3, %c0_30, %c0_31] : memref<1x4x8x8xbf16, #tpu.memory_space<vmem>>, vector<1x1x8x8xbf16>
    %84 = vector.shape_cast %83 : vector<1x1x8x8xbf16> to vector<8x8xbf16>
    %85 = arith.extf %84 : vector<8x8xbf16> to vector<8x8xf32>
    %86 = arith.addf %82, %85 : vector<8x8xf32>
    %cst_32 = arith.constant dense<0xFF800000> : vector<8xf32>
    %87 = vector.multi_reduction <maximumf>, %86, %cst_32 [1] : vector<8x8xf32> to vector<8xf32>
    %88 = vector.shape_cast %87 : vector<8xf32> to vector<8x1xf32>
    %89 = vector.broadcast %88 : vector<8x1xf32> to vector<8x8xf32>
    %90 = arith.subf %86, %89 : vector<8x8xf32>
    %91 = math.exp %90 : vector<8x8xf32>
    %cst_33 = arith.constant dense<0.000000e+00> : vector<8xf32>
    %92 = vector.multi_reduction <add>, %91, %cst_33 [1] : vector<8x8xf32> to vector<8xf32>
    %93 = vector.shape_cast %92 : vector<8xf32> to vector<8x1xf32>
    %94 = tpu.reciprocal %93 {approx = true} : vector<8x1xf32> -> vector<8x1xf32>
    %95 = vector.broadcast %94 : vector<8x1xf32> to vector<8x8xf32>
    %96 = arith.mulf %91, %95 : vector<8x8xf32>
    %97 = arith.truncf %96 : vector<8x8xf32> to vector<8x8xbf16>
    %cst_34 = arith.constant dense<0.000000e+00> : vector<8x8xf32>
    %98 = tpu.matmul %97, %81, %cst_34 {dimension_numbers = #tpu.dot_dimension_numbers<[1], [0], [0], [1], [0, 0, 1, 1], [], []>} : vector<8x8xbf16>, vector<8x8xbf16>, vector<8x8xf32> -> vector<8x8xf32>
    %99 = tpu.concatenate %29, %52, %75, %98 in 1 : vector<8x8xf32>, vector<8x8xf32>, vector<8x8xf32>, vector<8x8xf32> -> vector<8x32xf32>
    %c0_35 = arith.constant 0 : index
    %c0_36 = arith.constant 0 : index
    %c0_37 = arith.constant 0 : index
    %100 = vector.load %arg5[%c0_35, %c0_36, %c0_37] : memref<1x8x32xf32, #tpu.memory_space<vmem>>, vector<1x8x32xf32>
    %101 = vector.shape_cast %100 : vector<1x8x32xf32> to vector<8x32xf32>
    %102 = vector.shape_cast %99 : vector<8x32xf32> to vector<1x8x32xf32>
    tpu.vector_store %arg5[%c0_35, %c0_36, %c0_37], %102 {strides = array<i32>} : memref<1x8x32xf32, #tpu.memory_space<vmem>>, vector<1x8x32xf32>,
    return
  }
  func.func @transform_0(%arg0: i32) -> (i32, i32, i32) {
    %c0_i32 = arith.constant 0 : i32
    %c0_i32_0 = arith.constant 0 : i32
    %c0_i32_1 = arith.constant 0 : i32
    return %arg0, %c0_i32, %c0_i32_0 : i32, i32, i32
  }
  func.func @transform_1(%arg0: i32) -> (i32, i32) {
    %c0_i32 = arith.constant 0 : i32
    %c0_i32_0 = arith.constant 0 : i32
    %c0_i32_1 = arith.constant 0 : i32
    return %c0_i32, %c0_i32_0 : i32, i32
  }
  func.func @transform_2(%arg0: i32) -> (i32, i32) {
    %c0_i32 = arith.constant 0 : i32
    %c0_i32_0 = arith.constant 0 : i32
    %c0_i32_1 = arith.constant 0 : i32
    return %c0_i32, %c0_i32_0 : i32, i32
  }
  func.func @transform_3(%arg0: i32) -> (i32, i32, i32, i32) {
    %c0_i32 = arith.constant 0 : i32
    %c0_i32_0 = arith.constant 0 : i32
    %c0_i32_1 = arith.constant 0 : i32
    %c0_i32_2 = arith.constant 0 : i32
    return %arg0, %c0_i32, %c0_i32_0, %c0_i32_1 : i32, i32, i32, i32
  }
  func.func @transform_4(%arg0: i32) -> (i32, i32, i32) {
    %c0_i32 = arith.constant 0 : i32
    %c0_i32_0 = arith.constant 0 : i32
    %c0_i32_1 = arith.constant 0 : i32
    return %arg0, %c0_i32, %c0_i32_0 : i32, i32, i32
  }
}

</mosaic_0001>

<bundles_post_ra>
// kernel: ernie_layout_self_attention.1
= control target key start
LH: loop header
LB: loop body
LE: loop exit
PB: predicated region body
PF: predicated region fallthrough
CT: control target
= control target key end

     0   :  { %9 = vsyncpa [#allocation3], 0  ;;  %s1305_s0 = inlined_call_operand.vmem [shape: bf16[2,8,32], index: 0, kind: input, shape index: {}]   ;;  %s1306_s1 = inlined_call_operand.vmem [shape: bf16[32,96], index: 1, kind: input, shape index: {}]   ;;  %s1307_s2 = inlined_call_operand.vmem [shape: f32[1,96], index: 2, kind: input, shape index: {}]   ;;  %s1308_s3 = inlined_call_operand.vmem [shape: bf16[2,4,8,8], index: 3, kind: input, shape index: {}]   ;;  %s1309_s4 = inlined_call_operand.hbm [shape: f32[2,8,32], index: 4, kind: output, shape index: {}]  }
   0x1   :  { %11 = vsyncpa [#allocation3 + $0x1], 0  ;;  %s1120_s15 = smov 0   ;;  %s1122_s16 = smov 0  }
   0x2   :  { %s1124_s17 = smov 0   ;;  %s1126_s18 = smov 0  }
   0x3 LB: > { %s1141_s19 = sadd.s32 4294967295, %s1076_s18   ;;  %s838_s20 = sadd.s32 4294967294, %s1076_s18   ;;  %s1076_s18 = sphi %s1126_s18, %s1315_s18   ;;  %s1072_s17 = sphi %s1124_s17, %s1314_s17   ;;  %s1068_s16 = sphi %s1122_s16, %s1313_s16   ;;  %s1064_s15 = sphi %s1120_s15, %s1312_s15  }
   0x4   : > { %s1145_s21 = sadd.s32 1, %s1076_s18   ;;  %s118_s22 = sadd.s32 1, %s1072_s17 }
   0x5   : > { %s115_s23 = ssub.s32 %s1076_s18, %s1145_s21  ;;  %p128_p0 = scmp.ne.s32.totalorder %s1072_s17, %s1068_s16 }
   0x6   : > { %p116_p1 = scmp.eq.s32.totalorder %s115_s23, 0  ;;  %p129_p2 = scmp.eq.s32.totalorder %s1141_s19, 1 }
   0x7   : > { %p134_p3 = scmp.ne.s32.totalorder %s1068_s16, %s1064_s15  ;;  %p135_p4 = scmp.eq.s32.totalorder %s838_s20, 1 }
   0x8   : > { %s1156_s24 = scalar_select %p116_p1, %s1072_s17, %s118_s22  }
   0x9   : > { %p1158_p5 = por %p129_p2, %p128_p0  ;;  %p1162_p6 = por %p135_p4, %p134_p3 }
   0xa   : > { %p841_p7 = scmp.ge.s32.totalorder %s1076_s18, 1  ;;  %p174_p8 = scmp.lt.s32.totalorder %s1076_s18, 3 }
   0xc   : > { %p175_p9 = pnand %p841_p7, %p174_p8 }
   0xd   : > { %v996_v0 = vld [vmem:[%s1306_s1] sm:$0xff] (!%p175_p9)   ;;  %v1078_v1 = vmov (!%p175_p9), 0.0   ;;  %v997_v2 = vld [vmem:[%s1306_s1 + $0x8] sm:$0xff] (!%p175_p9)   ;;  %vm1079_vm0 = vmmov (!%p175_p9), 0   ;;  %p204_p10 = scmp.lt.s32.totalorder (!%p175_p9), %s1141_s19, 1  ;;  %vm238_vm1 = vcmask (!%p175_p9), 261120  }
   0xe   : > { %178 = sbr.rel (%p175_p9) target bundleno = 1299 (0x513), region = 36  ;;  %885 = vmatprep.subr.bf16.mxu0 (!%p175_p9), %v1078_v1  ;;  %893 = vmatprep.subr.bf16.mxu1 (!%p175_p9), %v1078_v1  ;;  %v846_v4 = vld [vmem:[%s1307_s2] ss:$0 sm:$0xff] (!%p175_p9)  ;;  %s1080_s12 = smov (!%p175_p9), 120   ;;  %vm288_vm2 = vcmask (!%p175_p9), 64512   ;;  %vm352_vm3 = vcmask (!%p175_p9), 1043456  }
   0xf   : > { %886 = vmatpush3.bf16.msra.mxu0 (!%p175_p9), %v996_v0  ;;  %889 = vmatprep.mubr.msk.bf16.mxu0 (!%p175_p9), %vm1079_vm0, %v1078_v1  ;;  %s1081_s13 = smov (!%p175_p9), 96   ;;  %s1082_s14 = smov (!%p175_p9), 80   ;;  %vm748_vm4 = vcmask (!%p175_p9), 130048   ;;  %vm750_vm5 = vcmask (!%p175_p9), 195584  }
  0x10   : > { %887 = vmatprep.subr.bf16.mxu0 (!%p175_p9), %v1078_v1  ;;  %895 = vmatprep.mubr.msk.bf16.mxu1 (!%p175_p9), %vm1079_vm0, %v1078_v1  ;;  %s1083_s20 = smov (!%p175_p9), 88   ;;  %s1084_s22 = smov (!%p175_p9), 72  }
  0x11   : > { %s1085_s23 = smov (!%p175_p9), 112   ;;  %s1086_s27 = smov (!%p175_p9), 104  }
  0x12   : > { %s1088_s7 = smov (!%p175_p9), 64   ;;  %s1089_s8 = smov (!%p175_p9), 40  }
  0x13   : > { %888 = vmatpush3.bf16.msra.mxu0 (!%p175_p9), %v997_v2  ;;  %s1091_s10 = smov (!%p175_p9), 8   ;;  %s1092_s11 = smov (!%p175_p9), 16  }
  0x14   : > { %899 = vmatprep.subr.bf16.mxu0 (!%p175_p9), %v1078_v1 }
  0x15   : > { %s1183_s5 = scalar_select %p204_p10, %s1141_s19, 1 }
  0x17   : > { %s843_s6 = sshll.u32 %s1183_s5, 2  ;;  %s865_s28 = sshll.u32 %s1183_s5, 4 }
  0x18   : > { %s207_s9 = scalar_lea.vmem %s1305_s0, %s843_s6  ;;  %s212_s6 = scalar_lea.vmem %s1308_s3, %s865_s28 }
  0x19   : > { %v214_v3 = vld [vmem:[%s207_s9] sm:$0xf]  ;;  %v855_v35 = vld [vmem:[%s212_s6 + $0x8] sm:$0xff]   ;;  %s1087_s5 = smov 56   ;;  %s1090_s9 = smov 48  }
  0x1a   : > { %890 = vmatmul.mubr.msk.bf16.vlgmr.msra.gmra.mrb[0].mxu0 %vm238_vm1, %v214_v3  ;;  %v283_v22 = vld [vmem:[%s212_s6] sm:$0xff]   ;;  %v511_v38 = vunpack.c.l.bf16 %v855_v35  ;;  %v624_v45 = vunpack.c.h.bf16 %v855_v35  ;;  %s1094_s6 = smov [#allocation2]  }
  0x1b   : > { %901 = vmatprep.mubr.msk.bf16.mxu0 %vm1079_vm0, %v1078_v1  ;;  %v284_v23 = vunpack.c.l.bf16 %v283_v22  ;;  %v398_v30 = vunpack.c.h.bf16 %v283_v22 }
  0xed   : > { %v276_v5 = vpop.f32.mrb[0].mxu0 }
  0xee   : > { %v277_v6 = vadd.f32 %v846_v4, %v276_v5  ;;  %v891_v7 = vpop.f32.mrb[1].mxu0 }
  0xef   : > { %v279_v8 = vpop.f32.mrb[2].mxu0 }
  0xf0   : > { %v1196_v9 = vpack.c.bf16 %v277_v6, %v277_v6  ;;  %v892_v10 = vpop.f32.mrb[3].mxu0 }
  0xf2   : > { %399 = vrot.lane.b32.xlu1 %v1196_v9, %s1080_s12  ;;  %286 = vrot.lane.b32.xlu0 %v1196_v9, %s1081_s13  ;;  %s1093_s12 = smov 24   ;;  %s201_s13 = sand.u32 1, %s1068_s16  }
  0xf6   : > { %514 = vrot.lane.b32.xlu1 %v1196_v9, %s1082_s14  ;;  %401 = vrot.lane.b32.xlu0 %v1196_v9, %s1083_s20  ;;  %s842_s14 = sshll.u32 %s201_s13, 3  ;;  %s862_s20 = sshll.u32 %s1141_s19, 7 }
  0xf7   : > { %s1262_s29 = scalar_lea.hbm %s1309_s4, %s862_s20  ;;  %s754_s19 = scalar_lea.sflag [#allocation3], %s201_s13 }
  0xfa   : > { %627 = vrot.lane.b32.xlu1 %v1196_v9, %s1084_s22  ;;  %512 = vrot.lane.b32.xlu0 %v1196_v9, %s1085_s23  ;;  %s203_s22 = scalar_lea.vmem [#allocation2], %s842_s14 }
  0xfb   : > { %s767_s23 = sshll.u32 %s203_s22, 4  ;;  %s1264_s23 = int_to_ptr.vmem [resolvable:$true] %s767_s23 }
  0xfc   : > { %s1014_s30 = scalar_lea.vmem %s1264_s23, 128 }
  0xfd   : > { %p1015_p11 = scmp.ne.s32.totalorder %s1264_s23, %s1014_s30 }
  0xfe   : > { %625 = vrot.lane.b32.xlu0 %v1196_v9, %s1086_s27 }
  0xff   : > { %p1016_p12 = pnand %p1015_p11, %p1158_p5 }
 0x101   : > { %p1017_p13 = pneg %p1016_p12 }
 0x164   : > { %v287_v11 = vpop.permute.xlu0 %286  ;;  %v400_v14 = vpop.permute.xlu1 %399 }
 0x165   : > { %v293_v12 = vsel %vm288_vm2, %v287_v11, 0 }
 0x166   : > { %894 = vmatpush3.bf16.xpose.msra.mxu1 %v293_v12 }
 0x167   : > { %905 = vmatprep.subr.bf16.mxu1 %v1078_v1 }
 0x168   : > { %v402_v13 = vpop.permute.xlu0 %401  ;;  %v515_v16 = vpop.permute.xlu1 %514 }
 0x169   : > { %v407_v15 = vsel %vm288_vm2, %v402_v13, 0  ;;  %v520_v17 = vsel %vm288_vm2, %v515_v16, 0 }
 0x16c   : > { %v628_v18 = vpop.permute.xlu1 %627  ;;  %v513_v19 = vpop.permute.xlu0 %512 }
 0x16d   : > { %896 = vmatmul.mubr.msk.bf16.vlgmr.msra.gmra.mrb[0].mxu1 %vm288_vm2, %v1196_v9  ;;  %v633_v20 = vsel %vm288_vm2, %v628_v18, 0 }
 0x16e   : > { %906 = vmatpush3.bf16.xpose.msra.mxu1 %v407_v15  ;;  %907 = vmatprep.mubr.msk.bf16.mxu1 %vm1079_vm0, %v1078_v1 }
 0x16f   : > { %917 = vmatprep.subr.bf16.mxu1 %v1078_v1 }
 0x170   : > { %v626_v21 = vpop.permute.xlu0 %625 }
 0x175   : > { %908 = vmatmul.mubr.msk.bf16.vlgmr.msra.gmra.mrb[4].mxu1 %vm288_vm2, %v400_v14 }
 0x176   : > { %918 = vmatpush3.bf16.xpose.msra.mxu1 %v520_v17  ;;  %919 = vmatprep.mubr.msk.bf16.mxu1 %vm1079_vm0, %v1078_v1 }
 0x177   : > { %929 = vmatprep.subr.bf16.mxu1 %v1078_v1 }
 0x17d   : > { %920 = vmatmul.mubr.msk.bf16.vlgmr.msra.gmra.mrb[8].mxu1 %vm288_vm2, %v513_v19 }
 0x17e   : > { %930 = vmatpush3.bf16.xpose.msra.mxu1 %v633_v20  ;;  %931 = vmatprep.mubr.msk.bf16.mxu1 %vm1079_vm0, %v1078_v1 }
 0x185   : > { %932 = vmatmul.mubr.msk.bf16.vlgmr.msra.gmra.mrb[12].mxu1 %vm288_vm2, %v626_v21 }
 0x240   : > { %v329_v24 = vpop.f32.mrb[0].mxu1 }
 0x241   : > { %v330_v25 = vadd.f32 %v329_v24, %v284_v23  ;;  %v897_v26 = vpop.f32.mrb[1].mxu1 }
 0x242   : > { %v332_v27 = vpop.f32.mrb[2].mxu1 }
 0x243   : > { %v898_v28 = vpop.f32.mrb[3].mxu1  ;;  %v335_v29 = vsel %vm288_vm2, %v330_v25, -inf }
 0x244   : > { %336 = vmax.xlane.f32.xlu1 %v335_v29 }
 0x248   : > { %v443_v31 = vpop.f32.mrb[4].mxu1 }
 0x249   : > { %v444_v32 = vadd.f32 %v443_v31, %v398_v30  ;;  %v909_v33 = vpop.f32.mrb[5].mxu1 }
 0x24a   : > { %v446_v34 = vpop.f32.mrb[6].mxu1 }
 0x24b   : > { %v910_v36 = vpop.f32.mrb[7].mxu1  ;;  %v449_v37 = vsel %vm288_vm2, %v444_v32, -inf }
 0x24c   : > { %450 = vmax.xlane.f32.xlu0 %v449_v37 }
 0x250   : > { %v556_v39 = vpop.f32.mrb[8].mxu1 }
 0x251   : > { %v557_v40 = vadd.f32 %v556_v39, %v511_v38  ;;  %v921_v41 = vpop.f32.mrb[9].mxu1 }
 0x252   : > { %v559_v42 = vpop.f32.mrb[10].mxu1 }
 0x253   : > { %v922_v43 = vpop.f32.mrb[11].mxu1  ;;  %v562_v44 = vsel %vm288_vm2, %v557_v40, -inf }
 0x254   : > { %563 = vmax.xlane.f32.xlu0 %v562_v44 }
 0x258   : > { %v669_v46 = vpop.f32.mrb[12].mxu1 }
 0x259   : > { %v670_v47 = vadd.f32 %v669_v46, %v624_v45  ;;  %v933_v48 = vpop.f32.mrb[13].mxu1 }
 0x25a   : > { %v672_v49 = vpop.f32.mrb[14].mxu1 }
 0x25b   : > { %v934_v50 = vpop.f32.mrb[15].mxu1  ;;  %v675_v51 = vsel %vm288_vm2, %v670_v47, -inf }
 0x25c   : > { %676 = vmax.xlane.f32.xlu1 %v675_v51 }
 0x2d1   : > { %v337_v52 = vpop.xlane.xlu1 %336 }
 0x2d2   : > { %v338_v53 = vsub.f32 %v330_v25, %v337_v52 }
 0x2d4   : > { %v339_v54 = vmul.f32 1.442695, %v338_v53 }
 0x2d6   : > { %998 = vpow2.f32 %v339_v54 }
 0x2d9   : > { %v451_v55 = vpop.xlane.xlu0 %450 }
 0x2da   : > { %v452_v56 = vsub.f32 %v444_v32, %v451_v55 }
 0x2dc   : > { %v453_v57 = vmul.f32 1.442695, %v452_v56 }
 0x2de   : > { %1000 = vpow2.f32 %v453_v57 }
 0x2e0   : > { %v999_v58 = vpop.eup %998 }
 0x2e1   : > { %v564_v59 = vpop.xlane.xlu0 %563  ;;  %v341_v60 = vsel %vm288_vm2, %v999_v58, 0.0 }
 0x2e2   : > { %v565_v61 = vsub.f32 %v557_v40, %v564_v59  ;;  %342 = vadd.xlane.f32.xlu0 %v341_v60 }
 0x2e4   : > { %v566_v62 = vmul.f32 1.442695, %v565_v61 }
 0x2e6   : > { %1002 = vpow2.f32 %v566_v62 }
 0x2e8   : > { %v1001_v63 = vpop.eup %1000 }
 0x2e9   : > { %v455_v0 = vsel %vm288_vm2, %v1001_v63, 0.0  ;;  %v677_v4 = vpop.xlane.xlu1 %676 }
 0x2ea   : > { %456 = vadd.xlane.f32.xlu1 %v455_v0  ;;  %v678_v5 = vsub.f32 %v670_v47, %v677_v4 }
 0x2ec   : > { %v679_v6 = vmul.f32 1.442695, %v678_v5 }
 0x2ee   : > { %1004 = vpow2.f32 %v679_v6 }
 0x2f0   : > { %v1003_v2 = vpop.eup %1002 }
 0x2f1   : > { %v568_v3 = vsel %vm288_vm2, %v1003_v2, 0.0 }
 0x2f2   : > { %569 = vadd.xlane.f32.xlu0 %v568_v3 }
 0x2f8   : > { %v1005_v7 = vpop.eup %1004 }
 0x2f9   : > { %v681_v8 = vsel %vm288_vm2, %v1005_v7, 0.0 }
 0x2fb   : > { %461 = vrot.lane.b32.xlu1 %v1196_v9, %s1087_s5  ;;  %s1018_s5 = sshll.u32 %s1094_s6, 4  ;;  %s1019_s5 = int_to_ptr.vmem [resolvable:$false] %s1018_s5 }
 0x2fc   : > { %p1021_p0 = scmp.lt.s32.totalorder %s1264_s23, %s1019_s5 }
 0x308   : > { %347 = vrot.lane.b32.xlu0 %v1196_v9, %s1088_s7  ;;  %s1020_s7 = scalar_lea.vmem %s1019_s5, 256 }
 0x309   : > { %p1022_p1 = scmp.lt.s32.totalorder %s1020_s7, %s1014_s30 }
 0x30b   : > { %p1023_p2 = por %p1022_p1, %p1021_p0 }
 0x30c   : > { %687 = vrot.lane.b32.xlu0 %v1196_v9, %s1089_s8 }
 0x30d   : > { %p1024_p3 = pnand %p1023_p2, %p1017_p13 }
 0x31f   : > { %682 = vadd.xlane.f32.xlu1 %v681_v8 }
 0x330   : > { %574 = vrot.lane.b32.xlu1 %v1196_v9, %s1090_s9 }
 0x36f   : > { %v343_v10 = vpop.xlane.xlu0 %342 }
 0x370   : > { %1006 = vrcp.f32 %v343_v10 }
 0x377   : > { %v457_v11 = vpop.xlane.xlu1 %456 }
 0x378   : > { %1008 = vrcp.f32 %v457_v11 }
 0x37a   : > { %v1007_v12 = vpop.eup %1006 }
 0x37b   : > { %v345_v14 = vmul.f32 %v1007_v12, %v999_v58  ;;  %v462_v17 = vpop.permute.xlu1 %461 }
 0x37c   : > { %v467_v20 = vsel %vm352_vm3, %v462_v17, 0 }
 0x37d   : > { %v346_v18 = vpack.c.bf16 %v345_v14, %v345_v14 }
 0x37f   : > { %v570_v13 = vpop.xlane.xlu0 %569 }
 0x380   : > { %1010 = vrcp.f32 %v570_v13 }
 0x382   : > { %v1009_v19 = vpop.eup %1008 }
 0x383   : > { %v348_v15 = vpop.permute.xlu0 %347  ;;  %v459_v9 = vmul.f32 %v1009_v19, %v1001_v63 }
 0x384   : > { %v354_v16 = vsel %vm352_vm3, %v348_v15, 0 }
 0x385   : > { %900 = vmatpush3.bf16.msra.mxu0 %v354_v16  ;;  %v460_v21 = vpack.c.bf16 %v459_v9, %v459_v9 }
 0x386   : > { %911 = vmatprep.subr.bf16.mxu0 %v1078_v1 }
 0x387   : > { %v688_v27 = vpop.permute.xlu0 %687 }
 0x388   : > { %902 = vmatmul.mubr.msk.bf16.vlgmr.msra.gmra.mrb[4].mxu0 %vm288_vm2, %v346_v18  ;;  %v693_v29 = vsel %vm352_vm3, %v688_v27, 0 }
 0x389   : > { %912 = vmatpush3.bf16.msra.mxu0 %v467_v20  ;;  %913 = vmatprep.mubr.msk.bf16.mxu0 %vm1079_vm0, %v1078_v1 }
 0x38a   : > { %923 = vmatprep.subr.bf16.mxu0 %v1078_v1  ;;  %v1011_v22 = vpop.eup %1010 }
 0x38b   : > { %v572_v24 = vmul.f32 %v1011_v22, %v1003_v2 }
 0x38d   : > { %v573_v28 = vpack.c.bf16 %v572_v24, %v572_v24 }
 0x390   : > { %914 = vmatmul.mubr.msk.bf16.vlgmr.msra.gmra.mrb[8].mxu0 %vm288_vm2, %v460_v21 }
 0x391   : > { %925 = vmatprep.mubr.msk.bf16.mxu0 %vm1079_vm0, %v1078_v1 }
 0x3ac   : > { %v683_v23 = vpop.xlane.xlu1 %682 }
 0x3ad   : > { %1012 = vrcp.f32 %v683_v23 }
 0x3b0   : > { %v575_v25 = vpop.permute.xlu1 %574 }
 0x3b1   : > { %v580_v26 = vsel %vm352_vm3, %v575_v25, 0 }
 0x3b2   : > { %924 = vmatpush3.bf16.msra.mxu0 %v580_v26 }
 0x3b3   : > { %935 = vmatprep.subr.bf16.mxu0 %v1078_v1 }
 0x3b5   : > { %926 = vmatmul.mubr.msk.bf16.vlgmr.msra.gmra.mrb[12].mxu0 %vm288_vm2, %v573_v28 }
 0x3b6   : > { %936 = vmatpush3.bf16.msra.mxu0 %v693_v29  ;;  %937 = vmatprep.mubr.msk.bf16.mxu0 %vm1079_vm0, %v1078_v1 }
 0x3b7   : > { %v1013_v30 = vpop.eup %1012 }
 0x3b8   : > { %v685_v31 = vmul.f32 %v1013_v30, %v1005_v7 }
 0x3ba   : > { %v686_v32 = vpack.c.bf16 %v685_v31, %v685_v31 }
 0x3bd   : > { %938 = vmatmul.mubr.msk.bf16.vlgmr.msra.gmra.mrb[16].mxu0 %vm288_vm2, %v686_v32 }
 0x45b   : > { %v390_v33 = vpop.f32.mrb[4].mxu0 }
 0x45c   : > { %v903_v34 = vpop.f32.mrb[5].mxu0 }
 0x45d   : > { %v393_v35 = vpop.f32.mrb[6].mxu0 }
 0x45e   : > { %v904_v36 = vpop.f32.mrb[7].mxu0 }
 0x463   : > { %v503_v37 = vpop.f32.mrb[8].mxu0 }
 0x464   : > { %736 = vrot.lane.b32.xlu1 %v503_v37, %s1091_s10  ;;  %v915_v38 = vpop.f32.mrb[9].mxu0 }
 0x465   : > { %v506_v39 = vpop.f32.mrb[10].mxu0 }
 0x466   : > { %v916_v40 = vpop.f32.mrb[11].mxu0 }
 0x488   : > { %v616_v41 = vpop.f32.mrb[12].mxu0 }
 0x489   : > { %740 = vrot.lane.b32.xlu0 %v616_v41, %s1092_s11  ;;  %v927_v1 = vpop.f32.mrb[13].mxu0 }
 0x48a   : > { %v619_v42 = vpop.f32.mrb[14].mxu0 }
 0x48b   : > { %v928_v43 = vpop.f32.mrb[15].mxu0 }
 0x490   : > { %v729_v44 = vpop.f32.mrb[16].mxu0 }
 0x491   : > { %744 = vrot.lane.b32.xlu1 %v729_v44, %s1093_s12  ;;  %v939_v45 = vpop.f32.mrb[17].mxu0 }
 0x492   : > { %v732_v46 = vpop.f32.mrb[18].mxu0 }
 0x493   : > { %v940_v47 = vpop.f32.mrb[19].mxu0 }
 0x4d6   : > { %v737_v48 = vpop.permute.xlu1 %736 }
 0x4d7   : > { %v747_v50 = vsel %vm288_vm2, %v390_v33, %v737_v48 }
 0x4fb   : > { %v741_v49 = vpop.permute.xlu0 %740 }
 0x4fc   : > { %v749_v51 = vsel %vm748_vm4, %v747_v50, %v741_v49 }
 0x503   : > { %v745_v52 = vpop.permute.xlu1 %744 }
 0x504   : > { %v751_v53 = vsel %vm750_vm5, %v749_v51, %v745_v52 }
 0x505   : > { %752 = vst.msk [vmem:[%s203_s22] sm:$0xff] %vm238_vm1, %v751_v53 }
 0x506   : > { %1027 = shalt.err (!%p1024_p3)
}
 0x507   : > { %s1028_s8 = scalar_lea.hbm %s1262_s29, 128  ;;  %s1032_s11 = scalar_lea.hbm %s1309_s4, 256 }
 0x508   : > { %p1029_p4 = scmp.ne.s32.totalorder %s1262_s29, %s1028_s8  ;;  %p1033_p9 = scmp.lt.u32.totalorder %s1262_s29, %s1309_s4 }
 0x509   : > { %p1034_p10 = scmp.lt.u32.totalorder %s1032_s11, %s1028_s8  ;;  %p1036_p12 = scmp.lt.u32.totalorder %s1028_s8, %s1262_s29 }
 0x50a   : > { %p1030_p7 = pnand %p1029_p4, %p1158_p5 }
 0x50b   : > { %p1035_p11 = por %p1034_p10, %p1033_p9 }
 0x50c   : > { %p1031_p8 = pneg %p1030_p7 }
 0x50d   : > { %p1037_p13 = por %p1036_p12, %p1035_p11 }
 0x50f   : > { %p1038_p0 = pnand %p1037_p13, %p1031_p8 }
 0x511   : > { %1041 = shalt.err (!%p1038_p0)
}
 0x512   : > { %941 = dma.vmem_to_hbm [thread:$0]  (%p1158_p5), %s1264_s23, 128, %s1262_s29, %s754_s19  }
 0x513 PF: > { %p947_p1 = scmp.ge.s32.totalorder %s1076_s18, 2  ;;  %s779_s14 = sand.u32 1, %s1064_s15  }
 0x514   : > { %s780_s20 = scalar_lea.sflag [#allocation3], %s779_s14 }
 0x515   : > { %p944_p2 = pnand %p947_p1, %p1162_p6 }
 0x517   : > { %1059 = dma.done.wait (!%p944_p2), %s780_s20, 128  }
 0x518   : > { %1061 = vsyncadd (!%p944_p2), %s780_s20, 4294967168  ;;  %p14_p3 = scmp.ge.s32.totalorder %s1145_s21, 4   ;;  %s1312_s15 = smov %s1068_s16 }
 0x519   : > { %s1313_s16 = smov %s1072_s17  ;;  %s1314_s17 = smov %s1156_s24 }
 0x51a   : > { %s1315_s18 = smov %s1145_s21  ;;  %16 = sbr.rel (!%p14_p3) target bundleno = 3 (0x3), region = 77 }
 0x521   :  { %785 = vsyncpa [#allocation3], 1 }
 0x522   :  { %787 = vsyncpa [#allocation3 + $0x1], 1 }

</bundles_post_ra>
